<compile_context>
chip_gen: v7x
topology: tpu7x:2x2x1
jax: 0.10.0
libtpu: 0.0.40
codegen_flags: <defaults>
</compile_context>

<pallas_src>
import jax
import jax.numpy as jnp
from jax.experimental import pallas as pl
from jax.experimental.pallas import tpu as pltpu


def interaction_kernel(gfeat_ref, pfeat_ref,
                       wg_ref, bg_ref, gammag_ref, betag_ref,
                       wp_ref, bp_ref, gammap_ref, betap_ref,
                       wga_ref, wpa_ref, bga_ref, bpa_ref,
                       out_ref):
    eps = 1e-5  # torch.nn.LayerNorm default

    def mlp_block(x, w, b, gamma, beta):
        # Linear -> LayerNorm -> ReLU  (two-pass mean/var, biased, like torch)
        h = jnp.dot(x, w, preferred_element_type=jnp.float32) + b
        mu = jnp.mean(h, axis=-1, keepdims=True)
        var = jnp.mean((h - mu) * (h - mu), axis=-1, keepdims=True)
        hn = (h - mu) * jax.lax.rsqrt(var + eps)
        hn = hn * gamma + beta
        return jnp.maximum(hn, 0.0)

    # bf16 from HBM, f32 compute
    g_in = gfeat_ref[...].astype(jnp.float32)
    p_in = pfeat_ref[...].astype(jnp.float32)

    g_align = mlp_block(g_in, wg_ref[...], bg_ref[...],
                        gammag_ref[...], betag_ref[...])
    p_align = mlp_block(p_in, wp_ref[...], bp_ref[...],
                        gammap_ref[...], betap_ref[...])

    # Linear(dim, 1) over the factored outer product, as VPU mul + lane reduce:
    #   s_g[n] = sum_j p_align[n, j] * w_ga[j]
    #   s_p[n] = sum_i g_align[n, i] * w_pa[i]
    s_g = jnp.sum(p_align * wga_ref[...], axis=-1, keepdims=True)  # (TILE_N, 1)
    s_p = jnp.sum(g_align * wpa_ref[...], axis=-1, keepdims=True)  # (TILE_N, 1)

    b_ga = bga_ref[0, 0]  # SMEM scalar
    b_pa = bpa_ref[0, 0]  # SMEM scalar

    geno_att = jax.nn.sigmoid(g_align * s_g + b_ga)
    path_att = jax.nn.sigmoid(p_align * s_p + b_pa)

    out_ref[...] = p_align * path_att + g_align * geno_att


def interaction_estimator(gfeat, pfeat, params, *, tile_n=512):
    B, L, D = gfeat.shape
    N = B * L

    # Activations as bf16 for HBM bandwidth; weights stay f32 (tiny, resident).
    g2 = gfeat.reshape(N, D).astype(jnp.bfloat16)
    p2 = pfeat.reshape(N, D).astype(jnp.bfloat16)

    # Row tile: >= 512 rows when N is large (amortizes per-grid-step overhead),
    # multiple of 16 (bf16 sublane packing).  Per-step VMEM at D=64:
    # 2 inputs * 2 bufs * 64 KiB + output 2 * 128 KiB ~= 0.5 MiB -> far under
    # even the v7x 32 MiB scoped budget.
    if N >= tile_n:
        t = tile_n
    else:
        t = max(16, ((N + 15) // 16) * 16)
    n_pad = pl.cdiv(N, t) * t
    if n_pad != N:
        pad = n_pad - N
        g2 = jnp.pad(g2, ((0, pad), (0, 0)))
        p2 = jnp.pad(p2, ((0, pad), (0, 0)))

    grid = (n_pad // t,)

    act_spec_in = pl.BlockSpec((t, D), lambda i: (i, 0))
    out_spec = pl.BlockSpec((t, D), lambda i: (i, 0))

    def const_spec(shape):
        # Weights / LN params: same block every step -> stay VMEM-resident.
        return pl.BlockSpec(shape, lambda i: (0,) * len(shape))

    smem_spec = pl.BlockSpec(memory_space=pltpu.MemorySpace.SMEM)

    inputs = (
        g2, p2,
        params["wg"], params["bg"], params["gamma_g"], params["beta_g"],
        params["wp"], params["bp"], params["gamma_p"], params["beta_p"],
        params["w_ga"], params["w_pa"], params["b_ga"], params["b_pa"],
    )
    in_specs = [
        act_spec_in, act_spec_in,
        const_spec(params["wg"].shape), const_spec(params["bg"].shape),
        const_spec(params["gamma_g"].shape), const_spec(params["beta_g"].shape),
        const_spec(params["wp"].shape), const_spec(params["bp"].shape),
        const_spec(params["gamma_p"].shape), const_spec(params["beta_p"].shape),
        const_spec(params["w_ga"].shape), const_spec(params["w_pa"].shape),
        smem_spec, smem_spec,
    ]

    out = pl.pallas_call(
        interaction_kernel,
        out_shape=jax.ShapeDtypeStruct((n_pad, D), jnp.float32),
        grid=grid,
        in_specs=in_specs,
        out_specs=out_spec,
        compiler_params=pltpu.CompilerParams(
            dimension_semantics=("parallel",),   # rows independent -> megacore
            vmem_limit_bytes=32 * 1024 * 1024),
    )(*inputs)

    return out[:N].reshape(B, L, D)


def make_params(key, dim):
    ks = jax.random.split(key, 8)
    scale = 0.05
    return {
        # geno_fc: Linear(dim, dim) + LayerNorm(dim)   (weights stored (in, out))
        "wg": scale * jax.random.normal(ks[0], (dim, dim), jnp.float32),
        "bg": scale * jax.random.normal(ks[1], (1, dim), jnp.float32),
        "gamma_g": jnp.ones((1, dim), jnp.float32),
        "beta_g": jnp.zeros((1, dim), jnp.float32),
        # path_fc
        "wp": scale * jax.random.normal(ks[2], (dim, dim), jnp.float32),
        "bp": scale * jax.random.normal(ks[3], (1, dim), jnp.float32),
        "gamma_p": jnp.ones((1, dim), jnp.float32),
        "beta_p": jnp.zeros((1, dim), jnp.float32),
        # geno_atten / path_atten: Linear(dim, 1) -> weight stored as (1, dim)
        "w_ga": scale * jax.random.normal(ks[4], (1, dim), jnp.float32),
        "b_ga": scale * jax.random.normal(ks[5], (1, 1), jnp.float32),
        "w_pa": scale * jax.random.normal(ks[6], (1, dim), jnp.float32),
        "b_pa": scale * jax.random.normal(ks[7], (1, 1), jnp.float32),
    }


def reference_forward(gfeat, pfeat, params):
    # Pure-JAX reference that literally materializes the (B, L, D, D) atten
    # tensor, mirroring the PyTorch forward.
    def mlp(x, w, b, gamma, beta):
        h = x @ w + b
        mu = jnp.mean(h, -1, keepdims=True)
        var = jnp.mean((h - mu) ** 2, -1, keepdims=True)
        hn = (h - mu) / jnp.sqrt(var + 1e-5) * gamma + beta
        return jax.nn.relu(hn)

    g_align = mlp(gfeat, params["wg"], params["bg"][0],
                  params["gamma_g"][0], params["beta_g"][0])
    p_align = mlp(pfeat, params["wp"], params["bp"][0],
                  params["gamma_p"][0], params["beta_p"][0])
    atten = g_align[..., :, None] * p_align[..., None, :]          # (B, L, D, D)
    geno_att = jax.nn.sigmoid(
        jnp.einsum("bldk,k->bld", atten, params["w_ga"][0]) + params["b_ga"][0, 0])
    atten_t = jnp.swapaxes(atten, -1, -2)
    path_att = jax.nn.sigmoid(
        jnp.einsum("bldk,k->bld", atten_t, params["w_pa"][0]) + params["b_pa"][0, 0])
    return p_align * path_att + g_align * geno_att


if __name__ == "__main__":
    batch, feat_len, dim = 2, 6, 64
    key = jax.random.PRNGKey(0)
    kg, kp, kparams = jax.random.split(key, 3)

    gfeat = jax.random.normal(kg, (batch, feat_len, dim), jnp.float32)
    pfeat = jax.random.normal(kp, (batch, feat_len, dim), jnp.float32)
    params = make_params(kparams, dim)

    out = interaction_estimator(gfeat, pfeat, params)
    out = jax.block_until_ready(out)

    # Reference sees the same bf16-quantized activations the kernel consumes.
    gq = gfeat.astype(jnp.bfloat16).astype(jnp.float32)
    pq = pfeat.astype(jnp.bfloat16).astype(jnp.float32)
    ref = reference_forward(gq, pq, params)

    assert out.shape == (batch, feat_len, dim)
    assert jnp.allclose(out, ref, rtol=1e-3, atol=1e-3), "mismatch vs reference"

    print("KERNEL_OK")
</pallas_src>

<mosaic_0001>
module attributes {stable_mosaic.version = 11 : i64} {
  func.func @interaction_kernel(%arg0: i32, %arg1: memref<16x64xbf16, #tpu.memory_space<vmem>>, %arg2: memref<16x64xbf16, #tpu.memory_space<vmem>>, %arg3: memref<64x64xf32, #tpu.memory_space<vmem>>, %arg4: memref<1x64xf32, #tpu.memory_space<vmem>>, %arg5: memref<1x64xf32, #tpu.memory_space<vmem>>, %arg6: memref<1x64xf32, #tpu.memory_space<vmem>>, %arg7: memref<64x64xf32, #tpu.memory_space<vmem>>, %arg8: memref<1x64xf32, #tpu.memory_space<vmem>>, %arg9: memref<1x64xf32, #tpu.memory_space<vmem>>, %arg10: memref<1x64xf32, #tpu.memory_space<vmem>>, %arg11: memref<1x64xf32, #tpu.memory_space<vmem>>, %arg12: memref<1x64xf32, #tpu.memory_space<vmem>>, %arg13: memref<1x1xf32, #tpu.memory_space<smem>>, %arg14: memref<1x1xf32, #tpu.memory_space<smem>>, %arg15: memref<16x64xf32, #tpu.memory_space<vmem>>) attributes {dimension_semantics = [#tpu.dimension_semantics<parallel>], iteration_bounds = array<i64: 1>, scalar_prefetch = 0 : i64, scratch_operands = 0 : i64, tpu.core_type = #tpu.core_type<tc>, window_params = [{transform_indices = @transform_0, window_bounds = array<i64: 16, 64>}, {transform_indices = @transform_1, window_bounds = array<i64: 16, 64>}, {pipeline_mode = #tpu.pipeline_mode<synchronous>, transform_indices = @transform_2, window_bounds = array<i64: 64, 64>}, {pipeline_mode = #tpu.pipeline_mode<synchronous>, transform_indices = @transform_3, window_bounds = array<i64: 1, 64>}, {pipeline_mode = #tpu.pipeline_mode<synchronous>, transform_indices = @transform_4, window_bounds = array<i64: 1, 64>}, {pipeline_mode = #tpu.pipeline_mode<synchronous>, transform_indices = @transform_5, window_bounds = array<i64: 1, 64>}, {pipeline_mode = #tpu.pipeline_mode<synchronous>, transform_indices = @transform_6, window_bounds = array<i64: 64, 64>}, {pipeline_mode = #tpu.pipeline_mode<synchronous>, transform_indices = @transform_7, window_bounds = array<i64: 1, 64>}, {pipeline_mode = #tpu.pipeline_mode<synchronous>, transform_indices = @transform_8, window_bounds = array<i64: 1, 64>}, {pipeline_mode = #tpu.pipeline_mode<synchronous>, transform_indices = @transform_9, window_bounds = array<i64: 1, 64>}, {pipeline_mode = #tpu.pipeline_mode<synchronous>, transform_indices = @transform_10, window_bounds = array<i64: 1, 64>}, {pipeline_mode = #tpu.pipeline_mode<synchronous>, transform_indices = @transform_11, window_bounds = array<i64: 1, 64>}, {transform_indices = @transform_12, window_bounds = array<i64: 1, 1>}, {transform_indices = @transform_13, window_bounds = array<i64: 1, 1>}, {transform_indices = @transform_14, window_bounds = array<i64: 16, 64>}]} {
    %c0 = arith.constant 0 : index
    %c0_0 = arith.constant 0 : index
    %0 = vector.load %arg1[%c0, %c0_0] : memref<16x64xbf16, #tpu.memory_space<vmem>>, vector<16x64xbf16>
    %1 = arith.extf %0 : vector<16x64xbf16> to vector<16x64xf32>
    %c0_1 = arith.constant 0 : index
    %c0_2 = arith.constant 0 : index
    %2 = vector.load %arg2[%c0_1, %c0_2] : memref<16x64xbf16, #tpu.memory_space<vmem>>, vector<16x64xbf16>
    %3 = arith.extf %2 : vector<16x64xbf16> to vector<16x64xf32>
    %c0_3 = arith.constant 0 : index
    %c0_4 = arith.constant 0 : index
    %4 = vector.load %arg3[%c0_3, %c0_4] : memref<64x64xf32, #tpu.memory_space<vmem>>, vector<64x64xf32>
    %c0_5 = arith.constant 0 : index
    %c0_6 = arith.constant 0 : index
    %5 = vector.load %arg4[%c0_5, %c0_6] : memref<1x64xf32, #tpu.memory_space<vmem>>, vector<1x64xf32>
    %c0_7 = arith.constant 0 : index
    %c0_8 = arith.constant 0 : index
    %6 = vector.load %arg5[%c0_7, %c0_8] : memref<1x64xf32, #tpu.memory_space<vmem>>, vector<1x64xf32>
    %c0_9 = arith.constant 0 : index
    %c0_10 = arith.constant 0 : index
    %7 = vector.load %arg6[%c0_9, %c0_10] : memref<1x64xf32, #tpu.memory_space<vmem>>, vector<1x64xf32>
    %cst = arith.constant dense<0.000000e+00> : vector<16x64xf32>
    %8 = tpu.matmul %1, %4, %cst {dimension_numbers = #tpu.dot_dimension_numbers<[1], [0], [0], [1], [0, 0, 1, 1], [], []>} : vector<16x64xf32>, vector<64x64xf32>, vector<16x64xf32> -> vector<16x64xf32>
    %9 = vector.broadcast %5 : vector<1x64xf32> to vector<16x64xf32>
    %10 = arith.addf %8, %9 : vector<16x64xf32>
    %cst_11 = arith.constant dense<0.000000e+00> : vector<16xf32>
    %11 = vector.multi_reduction <add>, %10, %cst_11 [1] : vector<16x64xf32> to vector<16xf32>
    %12 = vector.shape_cast %11 : vector<16xf32> to vector<16x1xf32>
    %cst_12 = arith.constant 6.400000e+01 : f32
    %13 = vector.broadcast %cst_12 : f32 to vector<16x1xf32>
    %14 = arith.divf %12, %13 : vector<16x1xf32>
    %15 = vector.broadcast %14 : vector<16x1xf32> to vector<16x64xf32>
    %16 = arith.subf %10, %15 : vector<16x64xf32>
    %17 = vector.broadcast %14 : vector<16x1xf32> to vector<16x64xf32>
    %18 = arith.subf %10, %17 : vector<16x64xf32>
    %19 = arith.mulf %16, %18 : vector<16x64xf32>
    %cst_13 = arith.constant dense<0.000000e+00> : vector<16xf32>
    %20 = vector.multi_reduction <add>, %19, %cst_13 [1] : vector<16x64xf32> to vector<16xf32>
    %21 = vector.shape_cast %20 : vector<16xf32> to vector<16x1xf32>
    %cst_14 = arith.constant 6.400000e+01 : f32
    %22 = vector.broadcast %cst_14 : f32 to vector<16x1xf32>
    %23 = arith.divf %21, %22 : vector<16x1xf32>
    %24 = vector.broadcast %14 : vector<16x1xf32> to vector<16x64xf32>
    %25 = arith.subf %10, %24 : vector<16x64xf32>
    %cst_15 = arith.constant 9.99999974E-6 : f32
    %26 = vector.broadcast %cst_15 : f32 to vector<16x1xf32>
    %27 = arith.addf %23, %26 : vector<16x1xf32>
    %28 = math.rsqrt %27 : vector<16x1xf32>
    %29 = vector.broadcast %28 : vector<16x1xf32> to vector<16x64xf32>
    %30 = arith.mulf %25, %29 : vector<16x64xf32>
    %31 = vector.broadcast %6 : vector<1x64xf32> to vector<16x64xf32>
    %32 = arith.mulf %30, %31 : vector<16x64xf32>
    %33 = vector.broadcast %7 : vector<1x64xf32> to vector<16x64xf32>
    %34 = arith.addf %32, %33 : vector<16x64xf32>
    %cst_16 = arith.constant 0.000000e+00 : f32
    %35 = vector.broadcast %cst_16 : f32 to vector<16x64xf32>
    %36 = arith.maximumf %34, %35 : vector<16x64xf32>
    %c0_17 = arith.constant 0 : index
    %c0_18 = arith.constant 0 : index
    %37 = vector.load %arg7[%c0_17, %c0_18] : memref<64x64xf32, #tpu.memory_space<vmem>>, vector<64x64xf32>
    %c0_19 = arith.constant 0 : index
    %c0_20 = arith.constant 0 : index
    %38 = vector.load %arg8[%c0_19, %c0_20] : memref<1x64xf32, #tpu.memory_space<vmem>>, vector<1x64xf32>
    %c0_21 = arith.constant 0 : index
    %c0_22 = arith.constant 0 : index
    %39 = vector.load %arg9[%c0_21, %c0_22] : memref<1x64xf32, #tpu.memory_space<vmem>>, vector<1x64xf32>
    %c0_23 = arith.constant 0 : index
    %c0_24 = arith.constant 0 : index
    %40 = vector.load %arg10[%c0_23, %c0_24] : memref<1x64xf32, #tpu.memory_space<vmem>>, vector<1x64xf32>
    %cst_25 = arith.constant dense<0.000000e+00> : vector<16x64xf32>
    %41 = tpu.matmul %3, %37, %cst_25 {dimension_numbers = #tpu.dot_dimension_numbers<[1], [0], [0], [1], [0, 0, 1, 1], [], []>} : vector<16x64xf32>, vector<64x64xf32>, vector<16x64xf32> -> vector<16x64xf32>
    %42 = vector.broadcast %38 : vector<1x64xf32> to vector<16x64xf32>
    %43 = arith.addf %41, %42 : vector<16x64xf32>
    %cst_26 = arith.constant dense<0.000000e+00> : vector<16xf32>
    %44 = vector.multi_reduction <add>, %43, %cst_26 [1] : vector<16x64xf32> to vector<16xf32>
    %45 = vector.shape_cast %44 : vector<16xf32> to vector<16x1xf32>
    %cst_27 = arith.constant 6.400000e+01 : f32
    %46 = vector.broadcast %cst_27 : f32 to vector<16x1xf32>
    %47 = arith.divf %45, %46 : vector<16x1xf32>
    %48 = vector.broadcast %47 : vector<16x1xf32> to vector<16x64xf32>
    %49 = arith.subf %43, %48 : vector<16x64xf32>
    %50 = vector.broadcast %47 : vector<16x1xf32> to vector<16x64xf32>
    %51 = arith.subf %43, %50 : vector<16x64xf32>
    %52 = arith.mulf %49, %51 : vector<16x64xf32>
    %cst_28 = arith.constant dense<0.000000e+00> : vector<16xf32>
    %53 = vector.multi_reduction <add>, %52, %cst_28 [1] : vector<16x64xf32> to vector<16xf32>
    %54 = vector.shape_cast %53 : vector<16xf32> to vector<16x1xf32>
    %cst_29 = arith.constant 6.400000e+01 : f32
    %55 = vector.broadcast %cst_29 : f32 to vector<16x1xf32>
    %56 = arith.divf %54, %55 : vector<16x1xf32>
    %57 = vector.broadcast %47 : vector<16x1xf32> to vector<16x64xf32>
    %58 = arith.subf %43, %57 : vector<16x64xf32>
    %cst_30 = arith.constant 9.99999974E-6 : f32
    %59 = vector.broadcast %cst_30 : f32 to vector<16x1xf32>
    %60 = arith.addf %56, %59 : vector<16x1xf32>
    %61 = math.rsqrt %60 : vector<16x1xf32>
    %62 = vector.broadcast %61 : vector<16x1xf32> to vector<16x64xf32>
    %63 = arith.mulf %58, %62 : vector<16x64xf32>
    %64 = vector.broadcast %39 : vector<1x64xf32> to vector<16x64xf32>
    %65 = arith.mulf %63, %64 : vector<16x64xf32>
    %66 = vector.broadcast %40 : vector<1x64xf32> to vector<16x64xf32>
    %67 = arith.addf %65, %66 : vector<16x64xf32>
    %cst_31 = arith.constant 0.000000e+00 : f32
    %68 = vector.broadcast %cst_31 : f32 to vector<16x64xf32>
    %69 = arith.maximumf %67, %68 : vector<16x64xf32>
    %c0_32 = arith.constant 0 : index
    %c0_33 = arith.constant 0 : index
    %70 = vector.load %arg11[%c0_32, %c0_33] : memref<1x64xf32, #tpu.memory_space<vmem>>, vector<1x64xf32>
    %71 = vector.broadcast %70 : vector<1x64xf32> to vector<16x64xf32>
    %72 = arith.mulf %69, %71 : vector<16x64xf32>
    %cst_34 = arith.constant dense<0.000000e+00> : vector<16xf32>
    %73 = vector.multi_reduction <add>, %72, %cst_34 [1] : vector<16x64xf32> to vector<16xf32>
    %74 = vector.shape_cast %73 : vector<16xf32> to vector<16x1xf32>
    %c0_35 = arith.constant 0 : index
    %c0_36 = arith.constant 0 : index
    %75 = vector.load %arg12[%c0_35, %c0_36] : memref<1x64xf32, #tpu.memory_space<vmem>>, vector<1x64xf32>
    %76 = vector.broadcast %75 : vector<1x64xf32> to vector<16x64xf32>
    %77 = arith.mulf %36, %76 : vector<16x64xf32>
    %cst_37 = arith.constant dense<0.000000e+00> : vector<16xf32>
    %78 = vector.multi_reduction <add>, %77, %cst_37 [1] : vector<16x64xf32> to vector<16xf32>
    %79 = vector.shape_cast %78 : vector<16xf32> to vector<16x1xf32>
    %c0_38 = arith.constant 0 : index
    %c0_39 = arith.constant 0 : index
    %80 = memref.load %arg13[%c0_38, %c0_39] : memref<1x1xf32, #tpu.memory_space<smem>>
    %c0_40 = arith.constant 0 : index
    %c0_41 = arith.constant 0 : index
    %81 = memref.load %arg14[%c0_40, %c0_41] : memref<1x1xf32, #tpu.memory_space<smem>>
    %82 = vector.broadcast %74 : vector<16x1xf32> to vector<16x64xf32>
    %83 = arith.mulf %36, %82 : vector<16x64xf32>
    %84 = vector.broadcast %80 : f32 to vector<16x64xf32>
    %85 = arith.addf %83, %84 : vector<16x64xf32>
    %86 = arith.negf %85 : vector<16x64xf32>
    %87 = math.exp %86 : vector<16x64xf32>
    %cst_42 = arith.constant 1.000000e+00 : f32
    %88 = vector.broadcast %cst_42 : f32 to vector<16x64xf32>
    %89 = arith.addf %88, %87 : vector<16x64xf32>
    %90 = arith.divf %88, %89 : vector<16x64xf32>
    %91 = vector.broadcast %79 : vector<16x1xf32> to vector<16x64xf32>
    %92 = arith.mulf %69, %91 : vector<16x64xf32>
    %93 = vector.broadcast %81 : f32 to vector<16x64xf32>
    %94 = arith.addf %92, %93 : vector<16x64xf32>
    %95 = arith.negf %94 : vector<16x64xf32>
    %96 = math.exp %95 : vector<16x64xf32>
    %cst_43 = arith.constant 1.000000e+00 : f32
    %97 = vector.broadcast %cst_43 : f32 to vector<16x64xf32>
    %98 = arith.addf %97, %96 : vector<16x64xf32>
    %99 = arith.divf %97, %98 : vector<16x64xf32>
    %100 = arith.mulf %69, %99 : vector<16x64xf32>
    %101 = arith.mulf %36, %90 : vector<16x64xf32>
    %102 = arith.addf %100, %101 : vector<16x64xf32>
    %c0_44 = arith.constant 0 : index
    %c0_45 = arith.constant 0 : index
    %103 = vector.load %arg15[%c0_44, %c0_45] : memref<16x64xf32, #tpu.memory_space<vmem>>, vector<16x64xf32>
    tpu.vector_store %arg15[%c0_44, %c0_45], %102 {strides = array<i32>} : memref<16x64xf32, #tpu.memory_space<vmem>>, vector<16x64xf32>,
    return
  }
  func.func @transform_0(%arg0: i32) -> (i32, i32) {
    %c0_i32 = arith.constant 0 : i32
    %c0_i32_0 = arith.constant 0 : i32
    return %arg0, %c0_i32 : i32, i32
  }
  func.func @transform_1(%arg0: i32) -> (i32, i32) {
    %c0_i32 = arith.constant 0 : i32
    %c0_i32_0 = arith.constant 0 : i32
    return %arg0, %c0_i32 : i32, i32
  }
  func.func @transform_2(%arg0: i32) -> (i32, i32) {
    %c0_i32 = arith.constant 0 : i32
    %c0_i32_0 = arith.constant 0 : i32
    %c0_i32_1 = arith.constant 0 : i32
    return %c0_i32, %c0_i32_0 : i32, i32
  }
  func.func @transform_3(%arg0: i32) -> (i32, i32) {
    %c0_i32 = arith.constant 0 : i32
    %c0_i32_0 = arith.constant 0 : i32
    %c0_i32_1 = arith.constant 0 : i32
    return %c0_i32, %c0_i32_0 : i32, i32
  }
  func.func @transform_4(%arg0: i32) -> (i32, i32) {
    %c0_i32 = arith.constant 0 : i32
    %c0_i32_0 = arith.constant 0 : i32
    %c0_i32_1 = arith.constant 0 : i32
    return %c0_i32, %c0_i32_0 : i32, i32
  }
  func.func @transform_5(%arg0: i32) -> (i32, i32) {
    %c0_i32 = arith.constant 0 : i32
    %c0_i32_0 = arith.constant 0 : i32
    %c0_i32_1 = arith.constant 0 : i32
    return %c0_i32, %c0_i32_0 : i32, i32
  }
  func.func @transform_6(%arg0: i32) -> (i32, i32) {
    %c0_i32 = arith.constant 0 : i32
    %c0_i32_0 = arith.constant 0 : i32
    %c0_i32_1 = arith.constant 0 : i32
    return %c0_i32, %c0_i32_0 : i32, i32
  }
  func.func @transform_7(%arg0: i32) -> (i32, i32) {
    %c0_i32 = arith.constant 0 : i32
    %c0_i32_0 = arith.constant 0 : i32
    %c0_i32_1 = arith.constant 0 : i32
    return %c0_i32, %c0_i32_0 : i32, i32
  }
  func.func @transform_8(%arg0: i32) -> (i32, i32) {
    %c0_i32 = arith.constant 0 : i32
    %c0_i32_0 = arith.constant 0 : i32
    %c0_i32_1 = arith.constant 0 : i32
    return %c0_i32, %c0_i32_0 : i32, i32
  }
  func.func @transform_9(%arg0: i32) -> (i32, i32) {
    %c0_i32 = arith.constant 0 : i32
    %c0_i32_0 = arith.constant 0 : i32
    %c0_i32_1 = arith.constant 0 : i32
    return %c0_i32, %c0_i32_0 : i32, i32
  }
  func.func @transform_10(%arg0: i32) -> (i32, i32) {
    %c0_i32 = arith.constant 0 : i32
    %c0_i32_0 = arith.constant 0 : i32
    %c0_i32_1 = arith.constant 0 : i32
    return %c0_i32, %c0_i32_0 : i32, i32
  }
  func.func @transform_11(%arg0: i32) -> (i32, i32) {
    %c0_i32 = arith.constant 0 : i32
    %c0_i32_0 = arith.constant 0 : i32
    %c0_i32_1 = arith.constant 0 : i32
    return %c0_i32, %c0_i32_0 : i32, i32
  }
  func.func @transform_12(%arg0: i32) -> (i32, i32) {
    %c0_i32 = arith.constant 0 : i32
    %c0_i32_0 = arith.constant 0 : i32
    %c0_i32_1 = arith.constant 0 : i32
    return %c0_i32, %c0_i32_0 : i32, i32
  }
  func.func @transform_13(%arg0: i32) -> (i32, i32) {
    %c0_i32 = arith.constant 0 : i32
    %c0_i32_0 = arith.constant 0 : i32
    %c0_i32_1 = arith.constant 0 : i32
    return %c0_i32, %c0_i32_0 : i32, i32
  }
  func.func @transform_14(%arg0: i32) -> (i32, i32) {
    %c0_i32 = arith.constant 0 : i32
    %c0_i32_0 = arith.constant 0 : i32
    return %arg0, %c0_i32 : i32, i32
  }
}

</mosaic_0001>

<bundles_post_ra>
// kernel: tpu_custom_call.1
= control target key start
LH: loop header
LB: loop body
LE: loop exit
PB: predicated region body
PF: predicated region fallthrough
CT: control target
= control target key end

     0   :  { %21 = vsyncpa [#allocation5], 0  ;;  %s908_s0 = inlined_call_operand.hbm [shape: bf16[16,64], index: 0, kind: input, shape index: {}]   ;;  %s909_s1 = inlined_call_operand.vmem [shape: bf16[16,64], index: 1, kind: input, shape index: {}]   ;;  %s910_s2 = inlined_call_operand.hbm [shape: f32[64,64], index: 2, kind: input, shape index: {}]   ;;  %s911_s3 = inlined_call_operand.vmem [shape: f32[1,64], index: 3, kind: input, shape index: {}]   ;;  %s912_s4 = inlined_call_operand.vmem [shape: f32[1,64], index: 4, kind: input, shape index: {}]   ;;  %s913_s5 = inlined_call_operand.vmem [shape: f32[1,64], index: 5, kind: input, shape index: {}]   ;;  %s914_s6 = inlined_call_operand.hbm [shape: f32[64,64], index: 6, kind: input, shape index: {}]   ;;  %s915_s7 = inlined_call_operand.vmem [shape: f32[1,64], index: 7, kind: input, shape index: {}]   ;;  %s916_s8 = inlined_call_operand.vmem [shape: f32[1,64], index: 8, kind: input, shape index: {}]   ;;  %s917_s9 = inlined_call_operand.vmem [shape: f32[1,64], index: 9, kind: input, shape index: {}]   ;;  %s918_s10 = inlined_call_operand.vmem [shape: f32[1,64], index: 10, kind: input, shape index: {}]   ;;  %s919_s11 = inlined_call_operand.vmem [shape: f32[1,64], index: 11, kind: input, shape index: {}]   ;;  %s920_s12 = inlined_call_operand.<no memory space> [shape: f32[1,1], index: 12, kind: input, shape index: {}]   ;;  %s921_s13 = inlined_call_operand.<no memory space> [shape: f32[1,1], index: 13, kind: input, shape index: {}]   ;;  %s922_s14 = inlined_call_operand.hbm [shape: f32[16,64], index: 14, kind: output, shape index: {}]  }
   0x1   :  { %22 = vsyncpa [#allocation8], 0 }
   0x2   :  { %23 = vsyncpa [#allocation6], 0  ;;  %s717_s29 = smov [#allocation7]   ;;  %s623_s17 = scalar_lea.hbm %s910_s2, 1024 }
   0x3   :  { %s43_s30 = sshll.u32 %s717_s29, 4  ;;  %p624_p0 = scmp.ne.s32.totalorder %s910_s2, %s623_s17  ;;  %s44_s30 = int_to_ptr.vmem [resolvable:$true] %s43_s30 }
   0x4   :  { %p627_p1 = scmp.lt.u32.totalorder %s623_s17, %s910_s2 }
   0x6   :  { %p629_p2 = pnand %p627_p1, %p624_p0 }
   0x8   :  { %632 = shalt.err (!%p629_p2)
}
   0x9   :  { %s633_s22 = scalar_lea.vmem %s44_s30, 1024  ;;  %p638_p4 = scmp.lt.s32.totalorder %s44_s30, %s44_s30 }
   0xa   :  { %p634_p3 = scmp.ne.s32.totalorder %s44_s30, %s633_s22  ;;  %p639_p5 = scmp.lt.s32.totalorder %s633_s22, %s633_s22 }
   0xc   :  { %p640_p6 = por %p639_p5, %p638_p4 }
   0xe   :  { %p641_p7 = pnand %p640_p6, %p634_p3 }
  0x10   :  { %644 = shalt.err (!%p641_p7)
}
  0x11   :  { %s718_s23 = smov 128   ;;  %s719_s24 = smov 8  }
  0x12   :  { %49 = dma.hbm_to_vmem [thread:$0]  %s910_s2, 1024, %s44_s30, [#allocation8], %s718_s23, %s718_s23, %s719_s24  }
  0x13   :  { %s720_s27 = smov [#allocation4]   ;;  %s645_s16 = scalar_lea.hbm %s908_s0, 128 }
  0x14   :  { %s29_s28 = sshll.u32 %s720_s27, 4  ;;  %p646_p8 = scmp.ne.s32.totalorder %s908_s0, %s645_s16  ;;  %s30_s28 = int_to_ptr.vmem [resolvable:$true] %s29_s28 }
  0x15   :  { %p649_p9 = scmp.lt.u32.totalorder %s645_s16, %s908_s0 }
  0x17   :  { %p651_p10 = pnand %p649_p9, %p646_p8 }
  0x19   :  { %654 = shalt.err (!%p651_p10)
}
  0x1a   :  { %s655_s21 = scalar_lea.vmem %s30_s28, 128  ;;  %p660_p12 = scmp.lt.s32.totalorder %s30_s28, %s30_s28 }
  0x1b   :  { %p656_p11 = scmp.ne.s32.totalorder %s30_s28, %s655_s21  ;;  %p661_p13 = scmp.lt.s32.totalorder %s655_s21, %s655_s21 }
  0x1d   :  { %p662_p0 = por %p661_p13, %p660_p12 }
  0x1f   :  { %p663_p1 = pnand %p662_p0, %p656_p11 }
  0x21   :  { %666 = shalt.err (!%p663_p1)
}
  0x22   :  { %s721_s2 = smov 64   ;;  %s722_s30 = smov 4  }
  0x23   :  { %35 = dma.hbm_to_vmem [thread:$0]  %s908_s0, 128, %s30_s28, [#allocation5], %s721_s2, %s721_s2, %s722_s30  }
  0x24   :  { %s723_s26 = smov [#allocation9]   ;;  %s667_s16 = scalar_lea.hbm %s914_s6, 1024 }
  0x25   :  { %s61_s27 = sshll.u32 %s723_s26, 4  ;;  %p668_p2 = scmp.ne.s32.totalorder %s914_s6, %s667_s16  ;;  %s62_s27 = int_to_ptr.vmem [resolvable:$true] %s61_s27 }
  0x26   :  { %p671_p3 = scmp.lt.u32.totalorder %s667_s16, %s914_s6 }
  0x28   :  { %p673_p4 = pnand %p671_p3, %p668_p2 }
  0x2a   :  { %676 = shalt.err (!%p673_p4)
}
  0x2b   :  { %s677_s21 = scalar_lea.vmem %s62_s27, 1024  ;;  %p682_p6 = scmp.lt.s32.totalorder %s62_s27, %s62_s27 }
  0x2c   :  { %p678_p5 = scmp.ne.s32.totalorder %s62_s27, %s677_s21  ;;  %p683_p7 = scmp.lt.s32.totalorder %s677_s21, %s677_s21 }
  0x2e   :  { %p684_p8 = por %p683_p7, %p682_p6 }
  0x30   :  { %p685_p9 = pnand %p684_p8, %p678_p5 }
  0x32   :  { %688 = shalt.err (!%p685_p9)
}
  0x33   :  { %67 = dma.hbm_to_vmem [thread:$0]  %s914_s6, 1024, %s62_s27, [#allocation8], %s718_s23, %s718_s23, %s719_s24  }
  0x34   :  { %711 = dma.done.wait [#allocation5], 128  }
  0x35   :  { %712 = vsyncadd [#allocation5], 4294967168 }
  0x36   :  { %713 = dma.done.wait [#allocation8], 2048  }
  0x37   :  { %714 = vsyncadd [#allocation8], 4294965248  ;;  %v99_v0 = vld [vmem:[#allocation7] sm:$0xff]  ;;  %v100_v1 = vld [vmem:[#allocation7 + $0x8] sm:$0xff]  ;;  %vm116_vm0 = vcmask 523264  }
  0x38   :  { %v243_v2 = vld [vmem:[#allocation9] sm:$0xff]  ;;  %v559_v3 = vpack.c.bf16 %v100_v1, %v99_v0  ;;  %v244_v4 = vld [vmem:[#allocation9 + $0x8] sm:$0xff]  ;;  %v101_v5 = vld [vmem:[#allocation7 + $0x10] sm:$0xff] }
  0x39   :  { %v102_v6 = vld [vmem:[#allocation7 + $0x18] sm:$0xff]  ;;  %v575_v7 = vpack.c.bf16 %v244_v4, %v243_v2  ;;  %v245_v9 = vld [vmem:[#allocation9 + $0x10] sm:$0xff]  ;;  %v103_v11 = vld [vmem:[#allocation7 + $0x20] sm:$0xff] }
  0x3a   :  { %v563_v8 = vpack.c.bf16 %v102_v6, %v101_v5  ;;  %v246_v10 = vld [vmem:[#allocation9 + $0x18] sm:$0xff]  ;;  %560 = vmatprep.subr.bf16.mxu0 %v559_v3  ;;  %v104_v13 = vld [vmem:[#allocation7 + $0x28] sm:$0xff]  ;;  %v247_v14 = vld [vmem:[#allocation9 + $0x20] sm:$0xff] }
  0x3b   :  { %v579_v12 = vpack.c.bf16 %v246_v10, %v245_v9  ;;  %v248_v15 = vld [vmem:[#allocation9 + $0x28] sm:$0xff]  ;;  %576 = vmatprep.subr.bf16.mxu1 %v575_v7  ;;  %562 = vmatpush3.bf16.msra.mxu0 %v559_v3  ;;  %v567_v16 = vpack.c.bf16 %v104_v13, %v103_v11  ;;  %v494_v17 = vld [vmem:[#allocation4] sm:$0xff]   ;;  %v105_v20 = vld [vmem:[#allocation7 + $0x30] sm:$0xff] }
  0x3c   :  { %578 = vmatpush3.bf16.msra.mxu1 %v575_v7  ;;  %564 = vmatprep.subr.bf16.mxu0 %v563_v8  ;;  %v498_v18 = vld [vmem:[%s909_s1] sm:$0xff]   ;;  %v583_v19 = vpack.c.bf16 %v248_v15, %v247_v14  ;;  %v495_v22 = vunpack.c.l.bf16 %v494_v17  ;;  %v249_v24 = vld [vmem:[#allocation9 + $0x30] sm:$0xff]  ;;  %v496_v28 = vunpack.c.h.bf16 %v494_v17 }
  0x3d   :  { %580 = vmatprep.subr.bf16.mxu1 %v579_v12  ;;  %v106_v21 = vld [vmem:[#allocation7 + $0x38] sm:$0xff]  ;;  %v499_v23 = vunpack.c.l.bf16 %v498_v18  ;;  %v500_v29 = vunpack.c.h.bf16 %v498_v18 }
  0x3e   :  { %v250_v25 = vld [vmem:[#allocation9 + $0x38] sm:$0xff]  ;;  %537 = vmatprep.mubr.msk.f32.mxu0 %vm116_vm0, %v495_v22  ;;  %v571_v26 = vpack.c.bf16 %v106_v21, %v105_v20 }
  0x3f   :  { %566 = vmatpush3.bf16.msra.mxu0 %v563_v8  ;;  %v587_v27 = vpack.c.bf16 %v250_v25, %v249_v24  ;;  %556 = vmatprep.mubr.msk.f32.mxu1 %vm116_vm0, %v499_v23  ;;  %v477_v30 = vld [vmem:[%s911_s3] ss:$0 sm:$0xff] }
  0x40   :  { %582 = vmatpush3.bf16.msra.mxu1 %v579_v12  ;;  %568 = vmatprep.subr.bf16.mxu0 %v567_v16  ;;  %v482_v32 = vld [vmem:[%s915_s7] ss:$0 sm:$0xff] }
  0x41   :  { %584 = vmatprep.subr.bf16.mxu1 %v583_v19  ;;  %v480_v13 = vld [vmem:[%s912_s4] ss:$0 sm:$0xff] }
  0x42   :  { %v485_v18 = vld [vmem:[%s916_s8] ss:$0 sm:$0xff] }
  0x43   :  { %570 = vmatpush3.bf16.msra.mxu0 %v567_v16  ;;  %v486_v22 = vld [vmem:[%s917_s9] ss:$0 sm:$0xff] }
  0x44   :  { %586 = vmatpush3.bf16.msra.mxu1 %v583_v19  ;;  %572 = vmatprep.subr.bf16.mxu0 %v571_v26  ;;  %v481_v19 = vld [vmem:[%s913_s5] ss:$0 sm:$0xff] }
  0x45   :  { %588 = vmatprep.subr.bf16.mxu1 %v587_v27 }
  0x47   :  { %574 = vmatpush3.bf16.msra.mxu0 %v571_v26 }
  0x48   :  { %590 = vmatpush3.bf16.msra.mxu1 %v587_v27 }
  0x4a   :  { %538 = vmatmul.mubr.msk.f32.vlgmr.msra.gmra.mrb[0].mxu0 %vm116_vm0, %v496_v28 }
  0x4b   :  { %557 = vmatmul.mubr.msk.f32.vlgmr.msra.gmra.mrb[0].mxu1 %vm116_vm0, %v500_v29  ;;  %v487_v29 = vld [vmem:[%s918_s10] ss:$0 sm:$0xff] }
 0x11d   :  { %v539_v31 = vpop.f32.mrb[0].mxu0 }
 0x11e   :  { %v558_v33 = vpop.f32.mrb[0].mxu1  ;;  %v189_v34 = vpop.f32.mrb[1].mxu0  ;;  %v195_v39 = vadd.f32 %v539_v31, %v477_v30 }
 0x11f   :  { %v190_v35 = vadd.f32 %v477_v30, %v189_v34  ;;  %v332_v36 = vpop.f32.mrb[1].mxu1  ;;  %v338_v37 = vadd.f32 %v558_v33, %v482_v32 }
 0x120   :  { %v333_v38 = vadd.f32 %v482_v32, %v332_v36  ;;  %v201_v43 = vsel %vm116_vm0, %v195_v39, 0.0 }
 0x121   :  { %v198_v40 = vsel %vm116_vm0, %v190_v35, 0.0  ;;  %v344_v42 = vsel %vm116_vm0, %v338_v37, 0.0 }
 0x122   :  { %v341_v41 = vsel %vm116_vm0, %v333_v38, 0.0  ;;  %199 = vadd.xlane.f32.xlu0 %v198_v40 }
 0x123   :  { %342 = vadd.xlane.f32.xlu1 %v341_v41 }
 0x126   :  { %202 = vadd.xlane.f32.xlu0 %v201_v43 }
 0x127   :  { %345 = vadd.xlane.f32.xlu1 %v344_v42 }
 0x1af   :  { %v200_v44 = vpop.xlane.xlu0 %199 }
 0x1b0   :  { %v343_v45 = vpop.xlane.xlu1 %342  ;;  %v205_v46 = vmul.f32 0.015625, %v200_v44 }
 0x1b1   :  { %v347_v47 = vmul.f32 0.015625, %v343_v45 }
 0x1b2   :  { %v207_v48 = vsub.f32 %v190_v35, %v205_v46  ;;  %v488_v35 = vld [vmem:[%s919_s11] ss:$0 sm:$0xff]  ;;  %v419_v46 = vstv %s920_s12  ;;  %s724_s12 = smov [#allocation10]  }
 0x1b3   :  { %v349_v49 = vsub.f32 %v333_v38, %v347_v47  ;;  %v203_v50 = vpop.xlane.xlu0 %202 }
 0x1b4   :  { %v346_v51 = vpop.xlane.xlu1 %345  ;;  %v206_v52 = vmul.f32 0.015625, %v203_v50  ;;  %v209_v53 = vmul.f32 %v207_v48, %v207_v48 }
 0x1b5   :  { %v348_v54 = vmul.f32 0.015625, %v346_v51  ;;  %v351_v57 = vmul.f32 %v349_v49, %v349_v49 }
 0x1b6   :  { %v208_v55 = vsub.f32 %v195_v39, %v206_v52  ;;  %v211_v56 = vsel %vm116_vm0, %v209_v53, 0.0  ;;  %v436_v52 = vstv %s921_s13  ;;  %s464_s13 = sshll.u32 %s724_s12, 4  ;;  %s465_s13 = int_to_ptr.vmem [resolvable:$true] %s464_s13 }
 0x1b7   :  { %v350_v58 = vsub.f32 %v338_v37, %v348_v54  ;;  %212 = vadd.xlane.f32.xlu0 %v211_v56  ;;  %v353_v60 = vsel %vm116_vm0, %v351_v57, 0.0  ;;  %s689_s20 = scalar_lea.vmem %s465_s13, 256  ;;  %p694_p11 = scmp.lt.s32.totalorder %s465_s13, %s465_s13 }
 0x1b8   :  { %v210_v59 = vmul.f32 %v208_v55, %v208_v55  ;;  %p690_p10 = scmp.ne.s32.totalorder %s465_s13, %s689_s20  ;;  %p695_p12 = scmp.lt.s32.totalorder %s689_s20, %s689_s20 }
 0x1b9   :  { %v352_v62 = vmul.f32 %v350_v58, %v350_v58 }
 0x1ba   :  { %v214_v61 = vsel %vm116_vm0, %v210_v59, 0.0  ;;  %p696_p13 = por %p695_p12, %p694_p11 }
 0x1bb   :  { %354 = vadd.xlane.f32.xlu0 %v353_v60  ;;  %215 = vadd.xlane.f32.xlu1 %v214_v61  ;;  %v356_v63 = vsel %vm116_vm0, %v352_v62, 0.0 }
 0x1bc   :  { %p697_p0 = pnand %p696_p13, %p690_p10 }
 0x1bf   :  { %357 = vadd.xlane.f32.xlu1 %v356_v63 }
 0x244   :  { %v213_v0 = vpop.xlane.xlu0 %212 }
 0x245   :  { %v217_v1 = vmul.f32 0.015625, %v213_v0 }
 0x247   :  { %v219_v2 = vadd.f32 1e-05, %v217_v1 }
 0x248   :  { %v216_v3 = vpop.xlane.xlu1 %215  ;;  %v355_v4 = vpop.xlane.xlu0 %354 }
 0x249   :  { %599 = vrsqrt.f32 %v219_v2  ;;  %v218_v5 = vmul.f32 0.015625, %v216_v3  ;;  %v359_v6 = vmul.f32 0.015625, %v355_v4 }
 0x24b   :  { %v220_v7 = vadd.f32 1e-05, %v218_v5  ;;  %v361_v8 = vadd.f32 1e-05, %v359_v6 }
 0x24c   :  { %v358_v9 = vpop.xlane.xlu1 %357 }
 0x24d   :  { %601 = vrsqrt.f32 %v220_v7  ;;  %v360_v10 = vmul.f32 0.015625, %v358_v9 }
 0x24e   :  { %603 = vrsqrt.f32 %v361_v8 }
 0x24f   :  { %v362_v11 = vadd.f32 1e-05, %v360_v10 }
 0x251   :  { %605 = vrsqrt.f32 %v362_v11 }
 0x253   :  { %v600_v12 = vpop.eup %599 }
 0x254   :  { %v223_v14 = vmul.f32 %v600_v12, %v207_v48 }
 0x256   :  { %v231_v16 = vmul.f32 %v480_v13, %v223_v14 }
 0x257   :  { %v602_v15 = vpop.eup %601 }
 0x258   :  { %v604_v17 = vpop.eup %603  ;;  %v224_v20 = vmul.f32 %v602_v15, %v208_v55  ;;  %v239_v26 = vadd.f32 %v481_v19, %v231_v16 }
 0x259   :  { %v365_v21 = vmul.f32 %v604_v17, %v349_v49 }
 0x25a   :  { %v232_v23 = vmul.f32 %v480_v13, %v224_v20  ;;  %v241_v33 = vmax.f32 %v239_v26, 0.0 }
 0x25b   :  { %v606_v24 = vpop.eup %605  ;;  %v373_v25 = vmul.f32 %v485_v18, %v365_v21 }
 0x25c   :  { %v366_v27 = vmul.f32 %v606_v24, %v350_v58  ;;  %v240_v31 = vadd.f32 %v481_v19, %v232_v23  ;;  %v407_v40 = vmul.f32 %v488_v35, %v241_v33 }
 0x25d   :  { %v381_v28 = vadd.f32 %v486_v22, %v373_v25 }
 0x25e   :  { %v374_v30 = vmul.f32 %v485_v18, %v366_v27  ;;  %v242_v38 = vmax.f32 %v240_v31, 0.0  ;;  %v409_v44 = vsel %vm116_vm0, %v407_v40, 0.0 }
 0x25f   :  { %v383_v32 = vmax.f32 %v381_v28, 0.0 }
 0x260   :  { %v382_v34 = vadd.f32 %v486_v22, %v374_v30  ;;  %v408_v43 = vmul.f32 %v488_v35, %v242_v38 }
 0x261   :  { %v392_v36 = vmul.f32 %v487_v29, %v383_v32 }
 0x262   :  { %v384_v37 = vmax.f32 %v382_v34, 0.0  ;;  %v412_v45 = vsel %vm116_vm0, %v408_v43, 0.0 }
 0x263   :  { %v394_v39 = vsel %vm116_vm0, %v392_v36, 0.0 }
 0x264   :  { %395 = vadd.xlane.f32.xlu0 %v394_v39  ;;  %v393_v41 = vmul.f32 %v487_v29, %v384_v37 }
 0x266   :  { %v397_v42 = vsel %vm116_vm0, %v393_v41, 0.0 }
 0x267   :  { %398 = vadd.xlane.f32.xlu1 %v397_v42 }
 0x268   :  { %410 = vadd.xlane.f32.xlu0 %v409_v44 }
 0x26b   :  { %413 = vadd.xlane.f32.xlu1 %v412_v45 }
 0x2f1   :  { %v396_v47 = vpop.xlane.xlu0 %395 }
 0x2f2   :  { %v417_v48 = vmul.f32 %v396_v47, %v241_v33 }
 0x2f4   :  { %v420_v49 = vadd.f32 %v419_v46, %v417_v48  ;;  %v399_v50 = vpop.xlane.xlu1 %398 }
 0x2f5   :  { %v418_v51 = vmul.f32 %v399_v50, %v242_v38  ;;  %v411_v53 = vpop.xlane.xlu0 %410 }
 0x2f6   :  { %v489_v54 = vmul.f32 -1.442695, %v420_v49  ;;  %v434_v55 = vmul.f32 %v411_v53, %v383_v32 }
 0x2f7   :  { %v421_v56 = vadd.f32 %v419_v46, %v418_v51 }
 0x2f8   :  { %607 = vpow2.f32 %v489_v54  ;;  %v437_v57 = vadd.f32 %v436_v52, %v434_v55  ;;  %v414_v58 = vpop.xlane.xlu1 %413 }
 0x2f9   :  { %v490_v59 = vmul.f32 -1.442695, %v421_v56  ;;  %v435_v60 = vmul.f32 %v414_v58, %v384_v37 }
 0x2fa   :  { %v491_v61 = vmul.f32 -1.442695, %v437_v57 }
 0x2fb   :  { %609 = vpow2.f32 %v490_v59  ;;  %v438_v62 = vadd.f32 %v436_v52, %v435_v60 }
 0x2fc   :  { %611 = vpow2.f32 %v491_v61 }
 0x2fd   :  { %v492_v63 = vmul.f32 -1.442695, %v438_v62 }
 0x2ff   :  { %613 = vpow2.f32 %v492_v63 }
 0x302   :  { %v608_v0 = vpop.eup %607 }
 0x303   :  { %v428_v1 = vadd.f32 1.0, %v608_v0 }
 0x305   :  { %v610_v2 = vpop.eup %609  ;;  %615 = vrcp.f32 %v428_v1 }
 0x306   :  { %v612_v3 = vpop.eup %611  ;;  %v429_v4 = vadd.f32 1.0, %v610_v2 }
 0x307   :  { %v445_v5 = vadd.f32 1.0, %v612_v3 }
 0x309   :  { %v614_v6 = vpop.eup %613  ;;  %617 = vrcp.f32 %v445_v5 }
 0x30a   :  { %619 = vrcp.f32 %v429_v4  ;;  %v446_v7 = vadd.f32 1.0, %v614_v6 }
 0x30c   :  { %621 = vrcp.f32 %v446_v7 }
 0x30f   :  { %v616_v8 = vpop.eup %615 }
 0x310   :  { %v453_v12 = vmul.f32 %v616_v8, %v241_v33 }
 0x313   :  { %v618_v9 = vpop.eup %617 }
 0x314   :  { %v620_v10 = vpop.eup %619  ;;  %v451_v11 = vmul.f32 %v618_v9, %v383_v32 }
 0x315   :  { %v454_v16 = vmul.f32 %v620_v10, %v242_v38 }
 0x316   :  { %v622_v13 = vpop.eup %621  ;;  %v455_v14 = vadd.f32 %v453_v12, %v451_v11 }
 0x317   :  { %v452_v15 = vmul.f32 %v622_v13, %v384_v37 }
 0x318   :  { %457 = vst.msk [vmem:[#allocation10] sm:$0xff] %vm116_vm0, %v455_v14 }
 0x319   :  { %v456_v17 = vadd.f32 %v454_v16, %v452_v15 }
 0x31b   :  { %458 = vst.msk [vmem:[#allocation10 + $0x8] sm:$0xff] %vm116_vm0, %v456_v17 }
 0x31c   :  { %700 = shalt.err (!%p697_p0)
}
 0x31d   :  { %s701_s28 = scalar_lea.hbm %s922_s14, 256 }
 0x31e   :  { %p702_p1 = scmp.ne.s32.totalorder %s922_s14, %s701_s28  ;;  %p705_p2 = scmp.lt.u32.totalorder %s701_s28, %s922_s14 }
 0x320   :  { %p707_p3 = pnand %p705_p2, %p702_p1 }
 0x322   :  { %710 = shalt.err (!%p707_p3)
}
 0x323   :  { %470 = dma.vmem_to_hbm [thread:$0]  %s465_s13, 256, %s922_s14, [#allocation6], %s718_s23, %s718_s23, %s719_s24  }
 0x324   :  { %715 = dma.done.wait [#allocation6], 256  }
 0x325   :  { %716 = vsyncadd [#allocation6], 4294967040 }
 0x326   :  { %474 = vsyncpa [#allocation5], 1 }
 0x327   :  { %475 = vsyncpa [#allocation8], 1 }
 0x328   :  { %476 = vsyncpa [#allocation6], 1 }

</bundles_post_ra>
